<compile_context>
chip_gen: v7x
topology: tpu7x:2x2x1
jax: 0.10.0
libtpu: 0.0.40
codegen_flags: <defaults>
</compile_context>

<pallas_src>
import numpy as np
import jax
import jax.numpy as jnp
from jax.experimental import pallas as pl
from jax.experimental.pallas import tpu as pltpu


# ---------------------------------------------------------------------------
# Generation-aware VMEM sizing
# ---------------------------------------------------------------------------
def _tpu_vmem_capacity_bytes(default: int = 64 * 1024 * 1024) -> int:
    try:
        info = pltpu.get_tpu_info()
        for name in ("vmem_capacity_bytes", "vmem_size_bytes", "vmem_bytes"):
            val = getattr(info, name, None)
            if val:
                return int(val)
    except Exception:
        pass
    return default


_VMEM_CAPACITY_BYTES = _tpu_vmem_capacity_bytes()
# ~48 MiB on v7x (64 MiB/TC), ~96 MiB on v5e/v6e (128 MiB).
_VMEM_LIMIT_BYTES = min((_VMEM_CAPACITY_BYTES * 3) // 4, 100 * 1024 * 1024)
# in + out (+ f32 acc) bytes per grid step: ~8 MiB on v7x, ~16 MiB on v5e/v6e.
_BLOCK_BUDGET_BYTES = max(_VMEM_CAPACITY_BYTES // 8, 2 * 1024 * 1024)


# ---------------------------------------------------------------------------
# Parameter construction (mirrors HaarDownsampling.__init__ exactly)
# ---------------------------------------------------------------------------
def make_haar_weights(channel_in: int) -> np.ndarray:
    w = np.ones((4, 1, 2, 2), dtype=np.float32)
    w[1, 0, 0, 1] = -1.0
    w[1, 0, 1, 1] = -1.0
    w[2, 0, 1, 0] = -1.0
    w[2, 0, 1, 1] = -1.0
    w[3, 0, 1, 0] = -1.0
    w[3, 0, 0, 1] = -1.0
    return np.concatenate([w] * channel_in, axis=0)  # (4*C, 1, 2, 2)


# ---------------------------------------------------------------------------
# Tiling helpers
# ---------------------------------------------------------------------------
def _pick_lane_tile(n_cols: int) -> int:
    """Output-column segment width: 128 lanes when possible (constant operator,
    O(W) MXU work); otherwise the largest power-of-two divisor, or the largest
    divisor <= 128 for awkward widths."""
    for cand in (128, 64, 32, 16, 8):
        if n_cols % cand == 0:
            return cand
    return max(d for d in range(1, min(n_cols, 128) + 1) if n_cols % d == 0)


def _pick_row_block(total_rows: int, bytes_per_row: int, budget: int):
    """Row block (second-to-last block dim): multiple of 8 sublanes (or full
    extent), sized to `budget` bytes per grid step.  Prefers exact divisors of
    total_rows; otherwise uses a cdiv grid with a padded (masked) last block."""
    cap = max(8, (budget // max(bytes_per_row, 1)) // 8 * 8)
    cap = min(cap, pl.cdiv(total_rows, 8) * 8)
    for d in range(cap, 7, -8):                    # largest exact divisor first
        if total_rows % d == 0:
            return d, total_rows // d
    if total_rows <= cap:                          # full extent is always legal
        return total_rows, 1
    return cap, pl.cdiv(total_rows, cap)           # padded (masked) last block


def _prefer_batch_major(n: int, nb: int) -> bool:
    # v7x megacore shards the leading "parallel" grid axis across its 2 TCs;
    # put an even-sized (or at least the larger) axis first.
    if n % 2 == 0:
        return True
    if nb % 2 == 0:
        return False
    return n >= nb


# ---------------------------------------------------------------------------
# Kernels
# ---------------------------------------------------------------------------
def _haar_fwd_kernel(x_ref, b_ref, o_ref):
    # x_ref: (1, Rb, 2W)   each row = [input row 2i | input row 2i+1]
    # b_ref: dense  (2W, 4*Wh)        -- fused full-row operator (small W), or
    #        segm.  (2, 2*LT, 4*LT)   -- per-half-row 128-lane-segmented operator
    # o_ref: (1, 4, Rb, Wh)           -- 4 Haar bands, /4 scale folded in
    w = x_ref.shape[2] // 2
    wh = w // 2
    if len(b_ref.shape) == 2:
        # Small widths: one fused matmul over the whole row-pair.
        acc = jnp.dot(x_ref[0], b_ref[...], preferred_element_type=jnp.float32)
        for k in range(4):
            o_ref[0, k] = acc[:, k * wh:(k + 1) * wh].astype(o_ref.dtype)
    else:
        # Large widths: constant segmented operator, O(W) MXU work per row.
        lt = b_ref.shape[2] // 4
        n_tiles = wh // lt
        b0 = b_ref[0]
        b1 = b_ref[1]
        for t in range(n_tiles):
            lhs0 = x_ref[0, :, pl.ds(2 * lt * t, 2 * lt)]          # row 2i
            lhs1 = x_ref[0, :, pl.ds(w + 2 * lt * t, 2 * lt)]      # row 2i+1
            acc = (jnp.dot(lhs0, b0, preferred_element_type=jnp.float32)
                   + jnp.dot(lhs1, b1, preferred_element_type=jnp.float32))
            for k in range(4):
                o_ref[0, k, :, pl.ds(lt * t, lt)] = (
                    acc[:, k * lt:(k + 1) * lt].astype(o_ref.dtype))


def _haar_rev_kernel(y_ref, r_ref, o_ref):
    # y_ref: (1, 4, Rb, W)            -- the 4 Haar bands of the same (c, i) rows
    # r_ref: dense (4, W, 4W) or segmented (4, LT, 4*LT) transpose operator
    # o_ref: (1, Rb, 4W)              -- [out row 2i | out row 2i+1], pixel-interleaved
    w = y_ref.shape[3]
    lt = r_ref.shape[1]
    if lt == w:
        # Small widths: accumulate the 4 band dots, one full-row store.
        acc = jnp.dot(y_ref[0, 0], r_ref[0], preferred_element_type=jnp.float32)
        for k in range(1, 4):
            acc = acc + jnp.dot(y_ref[0, k], r_ref[k],
                                preferred_element_type=jnp.float32)
        o_ref[0] = acc.astype(o_ref.dtype)
    else:
        n_tiles = w // lt
        rs = (r_ref[0], r_ref[1], r_ref[2], r_ref[3])
        for t in range(n_tiles):
            acc = jnp.dot(y_ref[0, 0, :, pl.ds(lt * t, lt)], rs[0],
                          preferred_element_type=jnp.float32)
            for k in range(1, 4):
                acc = acc + jnp.dot(y_ref[0, k, :, pl.ds(lt * t, lt)], rs[k],
                                    preferred_element_type=jnp.float32)
            # first 2*lt lanes -> output row 2i, last 2*lt -> output row 2i+1
            o_ref[0, :, pl.ds(2 * lt * t, 2 * lt)] = (
                acc[:, :2 * lt].astype(o_ref.dtype))
            o_ref[0, :, pl.ds(2 * w + 2 * lt * t, 2 * lt)] = (
                acc[:, 2 * lt:].astype(o_ref.dtype))


# ---------------------------------------------------------------------------
# Module wrapper
# ---------------------------------------------------------------------------
class HaarDownsamplingPallas:
    def __init__(self, channel_in: int):
        self.channel_in = channel_in
        self.haar_weights = make_haar_weights(channel_in)   # (4C,1,2,2), PyTorch parity
        self._w4 = self.haar_weights[:4, 0]                  # (4,2,2) butterfly coeffs
        self._fwd_ops = {}
        self._rev_ops = {}

    # --- constant Haar operator matrices (built in the input dtype) -----------
    def _fwd_operator(self, w: int, dtype):
        key = (w, jnp.dtype(dtype).name)
        if key not in self._fwd_ops:
            wh = w // 2
            lt = _pick_lane_tile(wh)
            if lt == wh:
                # dense fused operator over the full row-pair (W/2 <= 128)
                B = np.zeros((2 * w, 4 * wh), np.float32)
                for k in range(4):
                    for p in range(2):
                        for q in range(2):
                            for j in range(wh):
                                B[p * w + 2 * j + q, k * wh + j] = 0.25 * self._w4[k, p, q]
            else:
                # constant segmented operator: one column tile, all 4 bands stacked
                B = np.zeros((2, 2 * lt, 4 * lt), np.float32)
                for k in range(4):
                    for p in range(2):
                        for q in range(2):
                            for j in range(lt):
                                B[p, 2 * j + q, k * lt + j] = 0.25 * self._w4[k, p, q]
            self._fwd_ops[key] = (jnp.asarray(B, dtype=dtype), lt)
        return self._fwd_ops[key]

    def _rev_operator(self, w: int, dtype):
        key = (w, jnp.dtype(dtype).name)
        if key not in self._rev_ops:
            lt = _pick_lane_tile(w)
            if lt == w:
                R = np.zeros((4, w, 4 * w), np.float32)
                for k in range(4):
                    for p in range(2):
                        for q in range(2):
                            for j in range(w):
                                R[k, j, p * 2 * w + 2 * j + q] = self._w4[k, p, q]
            else:
                R = np.zeros((4, lt, 4 * lt), np.float32)
                for k in range(4):
                    for p in range(2):
                        for q in range(2):
                            for j in range(lt):
                                R[k, j, p * 2 * lt + 2 * j + q] = self._w4[k, p, q]
            self._rev_ops[key] = (jnp.asarray(R, dtype=dtype), lt)
        return self._rev_ops[key]

    # --- forward: (N, C, H, W) -> (N, 4C, H/2, W/2), channel order k*C + c ----
    def _forward(self, x):
        n, c, h, w = x.shape
        assert c == self.channel_in and h % 2 == 0 and w % 2 == 0
        hh, wh = h // 2, w // 2
        rows = c * hh                                  # one kernel row per (c, i)
        itemsize = jnp.dtype(x.dtype).itemsize
        bmat, lt = self._fwd_operator(w, x.dtype)
        segmented = len(bmat.shape) == 3
        n_tiles = wh // lt

        # per-row VMEM bytes: input (2W) + output (4*W/2) + f32 acc (4*LT)
        bytes_per_row = (2 * w + 4 * wh) * itemsize + 4 * lt * 4
        rb, nb = _pick_row_block(rows, bytes_per_row, _BLOCK_BUDGET_BYTES)
        batch_major = _prefer_batch_major(n, nb)
        if not batch_major and nb > 1 and nb % 2 == 1 and rb % 16 == 0:
            rb //= 2
            nb = pl.cdiv(rows, rb)

        xr = x.reshape(n, rows, 2 * w)                 # FREE: row-pair merged on lanes
        c_block = bmat.shape
        if batch_major:
            grid = (n, nb)
            x_map = lambda b, r: (b, r, 0)
            c_map = lambda b, r: (0,) * len(c_block)
            o_map = lambda b, r: (b, 0, r, 0)
        else:
            grid = (nb, n)
            x_map = lambda r, b: (b, r, 0)
            c_map = lambda r, b: (0,) * len(c_block)
            o_map = lambda r, b: (b, 0, r, 0)

        macs_per_row = (2 if segmented else 1) * n_tiles * (2 * lt) * (4 * lt)
        flops = 2 * n * rows * macs_per_row
        bytes_accessed = (x.size + n * 4 * rows * wh) * itemsize \
            + int(bmat.size) * int(bmat.dtype.itemsize)

        out = pl.pallas_call(
            _haar_fwd_kernel,
            out_shape=jax.ShapeDtypeStruct((n, 4, rows, wh), x.dtype),
            grid_spec=pltpu.PrefetchScalarGridSpec(
                num_scalar_prefetch=0,
                grid=grid,
                in_specs=[
                    pl.BlockSpec((1, rb, 2 * w), x_map),
                    pl.BlockSpec(c_block, c_map),
                ],
                out_specs=pl.BlockSpec((1, 4, rb, wh), o_map),
            ),
            compiler_params=pltpu.CompilerParams(
                dimension_semantics=("parallel", "parallel"),
                vmem_limit_bytes=_VMEM_LIMIT_BYTES),
            cost_estimate=pl.CostEstimate(flops=flops, transcendentals=0,
                                          bytes_accessed=bytes_accessed),
        )(xr, bmat)
        return out.reshape(n, 4 * c, hh, wh)           # FREE: (n,4,c*hh,wh)->(n,4c,hh,wh)

    # --- reverse: (N, 4C, H, W) [order k*C + c] -> (N, C, 2H, 2W) -------------
    def _reverse(self, y):
        n, c4, h, w = y.shape
        c = self.channel_in
        assert c4 == 4 * c
        rows = c * h
        itemsize = jnp.dtype(y.dtype).itemsize
        rmat, lt = self._rev_operator(w, y.dtype)
        n_tiles = w // lt

        bytes_per_row = (4 * w + 4 * w) * itemsize + 4 * lt * 4
        rb, nb = _pick_row_block(rows, bytes_per_row, _BLOCK_BUDGET_BYTES)
        batch_major = _prefer_batch_major(n, nb)
        if not batch_major and nb > 1 and nb % 2 == 1 and rb % 16 == 0:
            rb //= 2
            nb = pl.cdiv(rows, rb)

        yr = y.reshape(n, 4, rows, w)                  # FREE: split bands, merge (c, i)
        c_block = rmat.shape
        if batch_major:
            grid = (n, nb)
            y_map = lambda b, r: (b, 0, r, 0)
            c_map = lambda b, r: (0, 0, 0)
            o_map = lambda b, r: (b, r, 0)
        else:
            grid = (nb, n)
            y_map = lambda r, b: (b, 0, r, 0)
            c_map = lambda r, b: (0, 0, 0)
            o_map = lambda r, b: (b, r, 0)

        flops = 2 * n * rows * n_tiles * 4 * lt * (4 * lt)
        bytes_accessed = (y.size + n * rows * 4 * w) * itemsize \
            + int(rmat.size) * int(rmat.dtype.itemsize)

        out = pl.pallas_call(
            _haar_rev_kernel,
            out_shape=jax.ShapeDtypeStruct((n, rows, 4 * w), y.dtype),
            grid_spec=pltpu.PrefetchScalarGridSpec(
                num_scalar_prefetch=0,
                grid=grid,
                in_specs=[
                    pl.BlockSpec((1, 4, rb, w), y_map),
                    pl.BlockSpec(c_block, c_map),
                ],
                out_specs=pl.BlockSpec((1, rb, 4 * w), o_map),
            ),
            compiler_params=pltpu.CompilerParams(
                dimension_semantics=("parallel", "parallel"),
                vmem_limit_bytes=_VMEM_LIMIT_BYTES),
            cost_estimate=pl.CostEstimate(flops=flops, transcendentals=0,
                                          bytes_accessed=bytes_accessed),
        )(yr, rmat)
        return out.reshape(n, c, 2 * h, 2 * w)         # FREE: lane order == (2i+p, 2j+q)

    def __call__(self, x, rev: bool = False):
        return self._reverse(x) if rev else self._forward(x)


# ---------------------------------------------------------------------------
# Pure-JAX reference (same math, no Pallas) for verification
# ---------------------------------------------------------------------------
def reference_fwd(x, channel_in):
    a = x[:, :, 0::2, 0::2]
    b = x[:, :, 0::2, 1::2]
    c = x[:, :, 1::2, 0::2]
    d = x[:, :, 1::2, 1::2]
    ll = (a + b + c + d) / 4.0
    hl = (a - b + c - d) / 4.0
    lh = (a + b - c - d) / 4.0
    hh = (a - b - c + d) / 4.0
    y = jnp.stack([ll, hl, lh, hh], axis=1)            # (N,4,C,h/2,w/2)
    n = x.shape[0]
    return y.reshape(n, 4 * channel_in, x.shape[2] // 2, x.shape[3] // 2)


if __name__ == "__main__":
    channel_in = 4
    key = jax.random.PRNGKey(0)
    mod = HaarDownsamplingPallas(channel_in)
    fwd = jax.jit(lambda t: mod(t, rev=False))
    rev = jax.jit(lambda t: mod(t, rev=True))

    # Primary small shape (dense small-width path).
    x = jax.random.normal(key, (2, channel_in, 16, 16), dtype=jnp.float32)
    y = jax.block_until_ready(fwd(x))
    assert y.shape == (2, 4 * channel_in, 8, 8), y.shape
    np.testing.assert_allclose(np.asarray(y), np.asarray(reference_fwd(x, channel_in)),
                               rtol=1e-5, atol=1e-5)
    x_rec = jax.block_until_ready(rev(y))               # perfect reconstruction
    assert x_rec.shape == x.shape, x_rec.shape
    np.testing.assert_allclose(np.asarray(x_rec), np.asarray(x), rtol=1e-5, atol=1e-5)

    # Wider (still small) shape exercising the 128-lane-segmented operator path.
    x2 = jax.random.normal(jax.random.PRNGKey(0), (2, channel_in, 8, 512),
                           dtype=jnp.float32)
    y2 = jax.block_until_ready(fwd(x2))
    assert y2.shape == (2, 4 * channel_in, 4, 256), y2.shape
    np.testing.assert_allclose(np.asarray(y2), np.asarray(reference_fwd(x2, channel_in)),
                               rtol=1e-5, atol=1e-5)
    x2_rec = jax.block_until_ready(rev(y2))
    np.testing.assert_allclose(np.asarray(x2_rec), np.asarray(x2), rtol=1e-5, atol=1e-5)

    print("KERNEL_OK")
</pallas_src>

<mosaic_0001>
module attributes {stable_mosaic.version = 11 : i64} {
  func.func @_haar_fwd_kernel(%arg0: i32, %arg1: i32, %arg2: memref<1x32x32xf32, #tpu.memory_space<vmem>>, %arg3: memref<32x32xf32, #tpu.memory_space<vmem>>, %arg4: memref<1x4x32x8xf32, #tpu.memory_space<vmem>>) attributes {dimension_semantics = [#tpu.dimension_semantics<parallel>, #tpu.dimension_semantics<parallel>], iteration_bounds = array<i64: 2, 1>, scalar_prefetch = 0 : i64, scratch_operands = 0 : i64, tpu.core_type = #tpu.core_type<tc>, window_params = [{transform_indices = @transform_0, window_bounds = array<i64: 1, 32, 32>}, {pipeline_mode = #tpu.pipeline_mode<synchronous>, transform_indices = @transform_1, window_bounds = array<i64: 32, 32>}, {transform_indices = @transform_2, window_bounds = array<i64: 1, 4, 32, 8>}]} {
    %c0 = arith.constant 0 : index
    %c0_0 = arith.constant 0 : index
    %c0_1 = arith.constant 0 : index
    %0 = vector.load %arg2[%c0, %c0_0, %c0_1] : memref<1x32x32xf32, #tpu.memory_space<vmem>>, vector<1x32x32xf32>
    %1 = vector.shape_cast %0 : vector<1x32x32xf32> to vector<32x32xf32>
    %c0_2 = arith.constant 0 : index
    %c0_3 = arith.constant 0 : index
    %2 = vector.load %arg3[%c0_2, %c0_3] : memref<32x32xf32, #tpu.memory_space<vmem>>, vector<32x32xf32>
    %cst = arith.constant dense<0.000000e+00> : vector<32x32xf32>
    %3 = tpu.matmul %1, %2, %cst {dimension_numbers = #tpu.dot_dimension_numbers<[1], [0], [0], [1], [0, 0, 1, 1], [], []>} : vector<32x32xf32>, vector<32x32xf32>, vector<32x32xf32> -> vector<32x32xf32>
    %4 = vector.extract_strided_slice %3 {offsets = [0, 0], sizes = [32, 8], strides = [1, 1]} : vector<32x32xf32> to vector<32x8xf32>
    %c0_4 = arith.constant 0 : index
    %c0_5 = arith.constant 0 : index
    %c0_6 = arith.constant 0 : index
    %c0_7 = arith.constant 0 : index
    %5 = vector.load %arg4[%c0_4, %c0_5, %c0_6, %c0_7] : memref<1x4x32x8xf32, #tpu.memory_space<vmem>>, vector<1x1x32x8xf32>
    %6 = vector.shape_cast %5 : vector<1x1x32x8xf32> to vector<32x8xf32>
    %7 = vector.shape_cast %4 : vector<32x8xf32> to vector<1x1x32x8xf32>
    tpu.vector_store %arg4[%c0_4, %c0_5, %c0_6, %c0_7], %7 {strides = array<i32>} : memref<1x4x32x8xf32, #tpu.memory_space<vmem>>, vector<1x1x32x8xf32>,
    %8 = vector.extract_strided_slice %3 {offsets = [0, 8], sizes = [32, 8], strides = [1, 1]} : vector<32x32xf32> to vector<32x8xf32>
    %c0_8 = arith.constant 0 : index
    %c1 = arith.constant 1 : index
    %c0_9 = arith.constant 0 : index
    %c0_10 = arith.constant 0 : index
    %9 = vector.load %arg4[%c0_8, %c1, %c0_9, %c0_10] : memref<1x4x32x8xf32, #tpu.memory_space<vmem>>, vector<1x1x32x8xf32>
    %10 = vector.shape_cast %9 : vector<1x1x32x8xf32> to vector<32x8xf32>
    %11 = vector.shape_cast %8 : vector<32x8xf32> to vector<1x1x32x8xf32>
    tpu.vector_store %arg4[%c0_8, %c1, %c0_9, %c0_10], %11 {strides = array<i32>} : memref<1x4x32x8xf32, #tpu.memory_space<vmem>>, vector<1x1x32x8xf32>,
    %12 = vector.extract_strided_slice %3 {offsets = [0, 16], sizes = [32, 8], strides = [1, 1]} : vector<32x32xf32> to vector<32x8xf32>
    %c0_11 = arith.constant 0 : index
    %c2 = arith.constant 2 : index
    %c0_12 = arith.constant 0 : index
    %c0_13 = arith.constant 0 : index
    %13 = vector.load %arg4[%c0_11, %c2, %c0_12, %c0_13] : memref<1x4x32x8xf32, #tpu.memory_space<vmem>>, vector<1x1x32x8xf32>
    %14 = vector.shape_cast %13 : vector<1x1x32x8xf32> to vector<32x8xf32>
    %15 = vector.shape_cast %12 : vector<32x8xf32> to vector<1x1x32x8xf32>
    tpu.vector_store %arg4[%c0_11, %c2, %c0_12, %c0_13], %15 {strides = array<i32>} : memref<1x4x32x8xf32, #tpu.memory_space<vmem>>, vector<1x1x32x8xf32>,
    %16 = vector.extract_strided_slice %3 {offsets = [0, 24], sizes = [32, 8], strides = [1, 1]} : vector<32x32xf32> to vector<32x8xf32>
    %c0_14 = arith.constant 0 : index
    %c3 = arith.constant 3 : index
    %c0_15 = arith.constant 0 : index
    %c0_16 = arith.constant 0 : index
    %17 = vector.load %arg4[%c0_14, %c3, %c0_15, %c0_16] : memref<1x4x32x8xf32, #tpu.memory_space<vmem>>, vector<1x1x32x8xf32>
    %18 = vector.shape_cast %17 : vector<1x1x32x8xf32> to vector<32x8xf32>
    %19 = vector.shape_cast %16 : vector<32x8xf32> to vector<1x1x32x8xf32>
    tpu.vector_store %arg4[%c0_14, %c3, %c0_15, %c0_16], %19 {strides = array<i32>} : memref<1x4x32x8xf32, #tpu.memory_space<vmem>>, vector<1x1x32x8xf32>,
    return
  }
  func.func @transform_0(%arg0: i32, %arg1: i32) -> (i32, i32, i32) {
    %c0_i32 = arith.constant 0 : i32
    %c0_i32_0 = arith.constant 0 : i32
    return %arg0, %arg1, %c0_i32 : i32, i32, i32
  }
  func.func @transform_1(%arg0: i32, %arg1: i32) -> (i32, i32) {
    %c0_i32 = arith.constant 0 : i32
    %c0_i32_0 = arith.constant 0 : i32
    %c0_i32_1 = arith.constant 0 : i32
    return %c0_i32, %c0_i32_0 : i32, i32
  }
  func.func @transform_2(%arg0: i32, %arg1: i32) -> (i32, i32, i32, i32) {
    %c0_i32 = arith.constant 0 : i32
    %c0_i32_0 = arith.constant 0 : i32
    %c0_i32_1 = arith.constant 0 : i32
    return %arg0, %c0_i32, %arg1, %c0_i32_0 : i32, i32, i32, i32
  }
}

</mosaic_0001>

<bundles_post_ra>
// kernel: _lambda_.1
= control target key start
LH: loop header
LB: loop body
LE: loop exit
PB: predicated region body
PF: predicated region fallthrough
CT: control target
= control target key end

     0   :  { %s568_s9 = smov 0   ;;  %s570_s10 = smov 0   ;;  %s647_s0 = inlined_call_operand.vmem [shape: f32[2,32,32], index: 0, kind: input, shape index: {}]   ;;  %s648_s1 = inlined_call_operand.vmem [shape: f32[32,32], index: 1, kind: input, shape index: {}]   ;;  %s649_s2 = inlined_call_operand.vmem [shape: f32[2,4,32,8], index: 2, kind: output, shape index: {}]  }
   0x1   :  { %s572_s11 = smov 0  }
   0x2 LB: > { %s24_s12 = sadd.s32 1, %s544_s10  ;;  %p440_p0 = scmp.ge.s32.totalorder %s548_s11, 1  ;;  %s548_s11 = sphi %s572_s11, %s12_s11   ;;  %s544_s10 = sphi %s570_s10, %s651_s10   ;;  %s540_s9 = sphi %s568_s9, %s650_s9  }
   0x3   : > { %p26_p1 = scmp.ge.s32.totalorder %s24_s12, 2  ;;  %p133_p2 = scmp.lt.s32.totalorder %s548_s11, 3 }
   0x5   : > { %s653_s12 = smov (%p26_p1, %s24_s12), 0  ;;  %p134_p3 = pnand %p440_p0, %p133_p2 }
   0x6   : > { %v187_v0 = vld [vmem:[%s648_s1] sm:$0xff] (!%p134_p3)  ;;  %v188_v1 = vld [vmem:[%s648_s1 + $0x8] sm:$0xff] (!%p134_p3)  ;;  %v189_v2 = vld [vmem:[%s648_s1 + $0x10] sm:$0xff] (!%p134_p3)  ;;  %p164_p4 = scmp.lt.s32.totalorder (!%p134_p3), %s540_s9, 1  ;;  %vm191_vm0 = vcmask (!%p134_p3), 261120   ;;  %vm289_vm1 = vcmask (!%p134_p3), 64512  }
   0x7   : > { %137 = sbr.rel (%p134_p3) target bundleno = 367 (0x16f), region = 28  ;;  %v487_v3 = vpack.c.bf16 (!%p134_p3), %v188_v1, %v187_v0  ;;  %v190_v4 = vld [vmem:[%s648_s1 + $0x18] sm:$0xff] (!%p134_p3)  ;;  %s550_s29 = smov (!%p134_p3), 120  }
   0x8   : > { %v491_v5 = vpack.c.bf16 (!%p134_p3), %v190_v4, %v189_v2  ;;  %s551_s30 = smov (!%p134_p3), 112   ;;  %s552_s3 = smov (!%p134_p3), 104  }
   0x9   : > { %488 = vmatprep.subr.bf16.mxu0 (!%p134_p3), %v487_v3  ;;  %495 = vmatprep.subr.bf16.mxu1 (!%p134_p3), %v487_v3 }
   0xa   : > { %490 = vmatpush3.bf16.msra.mxu0 (!%p134_p3), %v487_v3  ;;  %497 = vmatpush3.bf16.msra.mxu1 (!%p134_p3), %v487_v3 }
   0xb   : > { %492 = vmatprep.subr.bf16.mxu0 (!%p134_p3), %v491_v5  ;;  %496 = vmatprep.subr.bf16.mxu1 (!%p134_p3), %v491_v5 }
   0xe   : > { %s655_s9 = smov (!%p164_p4, %s540_s9), 1  ;;  %494 = vmatpush3.bf16.msra.mxu0 %v491_v5  ;;  %498 = vmatpush3.bf16.msra.mxu1 %v491_v5 }
   0xf   : > { %s463_s21 = sshll.u32 %s655_s9, 5  ;;  %s464_s25 = sshll.u32 %s655_s9, 7 }
  0x10   : > { %s171_s24 = scalar_lea.vmem %s647_s0, %s463_s21  ;;  %s604_s28 = scalar_lea.vmem %s649_s2, %s464_s25 }
  0x11   : > { %v183_v6 = vld [vmem:[%s171_s24] sm:$0xff]  ;;  %v185_v7 = vld [vmem:[%s171_s24 + $0x10] sm:$0xff]  ;;  %v184_v8 = vld [vmem:[%s171_s24 + $0x8] sm:$0xff] }
  0x12   : > { %481 = vmatprep.mubr.msk.f32.mxu0 %vm191_vm0, %v183_v6  ;;  %484 = vmatprep.mubr.msk.f32.mxu1 %vm191_vm0, %v185_v7  ;;  %v186_v9 = vld [vmem:[%s171_s24 + $0x18] sm:$0xff] }
  0x13   : > { %482 = vmatmul.mubr.msk.f32.vlgmr.msra.gmra.mrb[0].mxu0 %vm191_vm0, %v184_v8  ;;  %485 = vmatmul.mubr.msk.f32.vlgmr.msra.gmra.mrb[0].mxu1 %vm191_vm0, %v186_v9 }
  0xe6   : > { %v483_v10 = vpop.f32.mrb[0].mxu0  ;;  %v486_v11 = vpop.f32.mrb[0].mxu1 }
  0xe7   : > { %291 = vst.msk [vmem:[%s604_s28 + $0x8] sm:$0xff] %vm289_vm1, %v483_v10  ;;  %293 = vst.msk [vmem:[%s604_s28 + $0x18] sm:$0xff] %vm289_vm1, %v486_v11  ;;  %304 = vrot.lane.b32.xlu1 %v486_v11, %s550_s29  ;;  %v280_v12 = vpop.f32.mrb[1].mxu1  ;;  %300 = vrot.lane.b32.xlu0 %v483_v10, %s550_s29  ;;  %v270_v13 = vpop.f32.mrb[1].mxu0 }
  0xe8   : > { %292 = vst.msk [vmem:[%s604_s28 + $0x10] sm:$0xff] %vm289_vm1, %v280_v12  ;;  %290 = vst.msk [vmem:[%s604_s28] sm:$0xff] %vm289_vm1, %v270_v13 }
  0xeb   : > { %317 = vrot.lane.b32.xlu1 %v483_v10, %s551_s30  ;;  %298 = vrot.lane.b32.xlu0 %v270_v13, %s550_s29 }
  0xef   : > { %321 = vrot.lane.b32.xlu1 %v486_v11, %s551_s30  ;;  %315 = vrot.lane.b32.xlu0 %v270_v13, %s551_s30 }
  0xf3   : > { %334 = vrot.lane.b32.xlu1 %v483_v10, %s552_s3  ;;  %319 = vrot.lane.b32.xlu0 %v280_v12, %s551_s30 }
  0xf7   : > { %302 = vrot.lane.b32.xlu1 %v280_v12, %s550_s29  ;;  %332 = vrot.lane.b32.xlu0 %v270_v13, %s552_s3 }
  0xfb   : > { %338 = vrot.lane.b32.xlu1 %v486_v11, %s552_s3  ;;  %336 = vrot.lane.b32.xlu0 %v280_v12, %s552_s3 }
 0x159   : > { %v305_v14 = vpop.permute.xlu1 %304  ;;  %v301_v15 = vpop.permute.xlu0 %300 }
 0x15a   : > { %452 = vst.msk [vmem:[%s604_s28 + $0x38] sm:$0xff] %vm289_vm1, %v305_v14  ;;  %450 = vst.msk [vmem:[%s604_s28 + $0x28] sm:$0xff] %vm289_vm1, %v301_v15 }
 0x15d   : > { %v318_v16 = vpop.permute.xlu1 %317  ;;  %v299_v17 = vpop.permute.xlu0 %298 }
 0x15e   : > { %454 = vst.msk [vmem:[%s604_s28 + $0x48] sm:$0xff] %vm289_vm1, %v318_v16  ;;  %449 = vst.msk [vmem:[%s604_s28 + $0x20] sm:$0xff] %vm289_vm1, %v299_v17 }
 0x161   : > { %v322_v18 = vpop.permute.xlu1 %321  ;;  %v316_v19 = vpop.permute.xlu0 %315 }
 0x162   : > { %456 = vst.msk [vmem:[%s604_s28 + $0x58] sm:$0xff] %vm289_vm1, %v322_v18  ;;  %453 = vst.msk [vmem:[%s604_s28 + $0x40] sm:$0xff] %vm289_vm1, %v316_v19 }
 0x165   : > { %v335_v20 = vpop.permute.xlu1 %334  ;;  %v320_v21 = vpop.permute.xlu0 %319 }
 0x166   : > { %458 = vst.msk [vmem:[%s604_s28 + $0x68] sm:$0xff] %vm289_vm1, %v335_v20  ;;  %455 = vst.msk [vmem:[%s604_s28 + $0x50] sm:$0xff] %vm289_vm1, %v320_v21 }
 0x169   : > { %v303_v22 = vpop.permute.xlu1 %302  ;;  %v333_v23 = vpop.permute.xlu0 %332 }
 0x16a   : > { %451 = vst.msk [vmem:[%s604_s28 + $0x30] sm:$0xff] %vm289_vm1, %v303_v22  ;;  %457 = vst.msk [vmem:[%s604_s28 + $0x60] sm:$0xff] %vm289_vm1, %v333_v23 }
 0x16d   : > { %v339_v24 = vpop.permute.xlu1 %338  ;;  %v337_v25 = vpop.permute.xlu0 %336 }
 0x16e   : > { %460 = vst.msk [vmem:[%s604_s28 + $0x78] sm:$0xff] %vm289_vm1, %v339_v24  ;;  %459 = vst.msk [vmem:[%s604_s28 + $0x70] sm:$0xff] %vm289_vm1, %v337_v25 }
 0x16f PF: > { %s12_s11 = sadd.s32 1, %s548_s11   ;;  %s650_s9 = smov %s544_s10 }
 0x170   : > { %p9_p5 = scmp.ge.s32.totalorder %s12_s11, 4   ;;  %s651_s10 = smov %s653_s12 }
 0x172   :  { %11 = sbr.rel (!%p9_p5) target bundleno = 2 (0x2), region = 61 }

</bundles_post_ra>
